<compile_context>
chip_gen: v7x
topology: tpu7x:2x2x1
jax: 0.10.0
libtpu: 0.0.40
codegen_flags: <defaults>
</compile_context>

<pallas_src>
import functools

import jax
import jax.numpy as jnp
from jax.experimental import pallas as pl
from jax.experimental.pallas import tpu as pltpu


# ----------------------------------------------------------------------------
# Sinusoidal table (precomputed in plain JAX — matches the PyTorch buffer).
# ----------------------------------------------------------------------------
def make_pe_table(d_model: int, max_len: int = 32, wavelen_fact: float = 1e6):
    """Deterministic sinusoidal position-encoding table, shape (max_len, d_model)."""
    if d_model % 2 != 0:
        raise ValueError("d_model must be even")
    position = jnp.arange(0, max_len, dtype=jnp.float32)[:, None]        # (L, 1)
    div_term = jnp.exp(
        jnp.arange(0, d_model, 2, dtype=jnp.float32)
        * (-jnp.log(jnp.float32(wavelen_fact)) / d_model)
    )                                                                     # (d/2,)
    args = position * div_term                                            # (L, d/2)
    # interleave: even columns sin, odd columns cos (matches pe[:,0::2]/pe[:,1::2])
    pe = jnp.stack([jnp.sin(args), jnp.cos(args)], axis=-1).reshape(max_len, d_model)
    return pe.astype(jnp.float32)


# ----------------------------------------------------------------------------
# Pallas kernel: out2d[s, :] = x2d[s, :] + tile(pe[s, :], batch)
#   x_ref/o_ref : (ts, batch*embed) streamed tile of the folded input/output
#   pe_ref      : (seq_padded, embed) resident table (DMA'd once)
# ----------------------------------------------------------------------------
def _pe_add_kernel(x_ref, pe_ref, o_ref, *, ts, batch):
    i = pl.program_id(0)
    row0 = pl.multiple_of(i * ts, ts)
    pe = pe_ref[pl.ds(row0, ts), :]                       # (ts, embed)
    if batch > 1:
        # lane-repeat across the folded batch dimension (no extra HBM traffic)
        pe = jnp.concatenate([pe] * batch, axis=-1)       # (ts, batch*embed)
    o_ref[...] = x_ref[...] + pe


_TARGET_TILE_BYTES = 2 * 1024 * 1024   # ~2 MiB/buffer: near-roofline, VMEM-safe on v7x
_MIN_PALLAS_BYTES = 256 * 1024         # below this, a fused plain-JAX add wins


def position_encoding(x: jax.Array, pe_table: jax.Array, *, use_pallas=None) -> jax.Array:
    """
    x:        (seq, batch, embed)
    pe_table: (max_len, embed) float32
    returns:  (1, seq, batch, embed)  -- matches PyTorch broadcast semantics
    """
    seq, batch, embed = x.shape
    max_len = pe_table.shape[0]
    if seq > max_len:
        raise ValueError(
            f"Input sequence length {seq} is greater than the maximum length {max_len}"
        )

    itemsize = jnp.dtype(x.dtype).itemsize
    pe_slice = pe_table[:seq].astype(x.dtype)             # (seq, embed)

    if use_pallas is None:
        use_pallas = x.size * itemsize >= _MIN_PALLAS_BYTES
    if not use_pallas:
        # Tiny shapes: let XLA fuse the add into neighbors (kernel launch would dominate).
        return (x + pe_slice[:, None, :])[None]

    # ---- tile sizing over the seq axis (folded last dim stays full / lane-dense) ----
    row_bytes = batch * embed * itemsize
    ts = max(8, (_TARGET_TILE_BYTES // max(row_bytes, 1)) // 8 * 8)   # multiple of 8
    if ts >= seq or seq < 8:
        ts = seq                                          # single full-dim block: always legal
    num_tiles = pl.cdiv(seq, ts)
    seq_padded = num_tiles * ts

    x2d = x.reshape(seq, batch * embed)                   # free row-major fold
    pe_padded = pe_slice
    if seq_padded != seq:
        pe_padded = jnp.pad(pe_slice, ((0, seq_padded - seq), (0, 0)))

    # explicit VMEM budget: double-buffered x-in + out tiles + resident pe (+ margin)
    tile_bytes = ts * row_bytes
    pe_bytes = seq_padded * embed * itemsize
    vmem_limit = int(max(4 * tile_bytes + 2 * pe_bytes + (4 << 20), 32 << 20))

    out2d = pl.pallas_call(
        functools.partial(_pe_add_kernel, ts=ts, batch=batch),
        out_shape=jax.ShapeDtypeStruct((seq, batch * embed), x.dtype),
        grid=(num_tiles,),
        in_specs=[
            pl.BlockSpec((ts, batch * embed), lambda i: (i, 0)),       # streamed x tiles
            pl.BlockSpec((seq_padded, embed), lambda i: (0, 0)),       # resident pe table
        ],
        out_specs=pl.BlockSpec((ts, batch * embed), lambda i: (i, 0)),
        compiler_params=pltpu.CompilerParams(
            dimension_semantics=("parallel",),             # megacore sharding on v7x
            vmem_limit_bytes=vmem_limit,
        ),
    )(x2d, pe_padded)

    # PyTorch: x(seq,batch,E) + pe(1,seq,1,E) broadcasts to (1,seq,batch,E)
    return out2d.reshape(seq, batch, embed)[None]


if __name__ == "__main__":
    d_model = 32
    max_len = 32
    seq, batch = 8, 2

    key = jax.random.PRNGKey(0)
    k1, k2 = jax.random.split(key)

    # --- case 1: shapes implied by the module defaults (seq=8, batch=2, embed=32) ---
    x = jax.random.normal(k1, (seq, batch, d_model), dtype=jnp.float32)
    pe_table = make_pe_table(d_model, max_len=max_len, wavelen_fact=1e6)

    out = position_encoding(x, pe_table, use_pallas=True)   # force the kernel path
    out = jax.block_until_ready(out)

    ref = x[None] + pe_table[:seq][None, :, None, :]
    assert out.shape == (1, seq, batch, d_model)
    assert jnp.allclose(out, ref, atol=1e-6, rtol=1e-6), "mismatch vs reference (case 1)"

    # --- case 2: lane-aligned embed (128) and larger batch, still small ---
    d2, seq2, batch2 = 128, 32, 16
    x2 = jax.random.normal(k2, (seq2, batch2, d2), dtype=jnp.float32)
    pe2 = make_pe_table(d2, max_len=32, wavelen_fact=1e6)

    out2 = jax.block_until_ready(position_encoding(x2, pe2, use_pallas=True))
    ref2 = x2[None] + pe2[:seq2][None, :, None, :]
    assert out2.shape == (1, seq2, batch2, d2)
    assert jnp.allclose(out2, ref2, atol=1e-6, rtol=1e-6), "mismatch vs reference (case 2)"

    print("KERNEL_OK")
</pallas_src>

<mosaic_0001>
module attributes {stable_mosaic.version = 11 : i64} {
  func.func @_pe_add_kernel(%arg0: i32, %arg1: memref<8x64xf32, #tpu.memory_space<vmem>>, %arg2: memref<8x32xf32, #tpu.memory_space<vmem>>, %arg3: memref<8x64xf32, #tpu.memory_space<vmem>>) attributes {dimension_semantics = [#tpu.dimension_semantics<parallel>], iteration_bounds = array<i64: 1>, scalar_prefetch = 0 : i64, scratch_operands = 0 : i64, tpu.core_type = #tpu.core_type<tc>, window_params = [{transform_indices = @transform_0, window_bounds = array<i64: 8, 64>}, {pipeline_mode = #tpu.pipeline_mode<synchronous>, transform_indices = @transform_1, window_bounds = array<i64: 8, 32>}, {transform_indices = @transform_2, window_bounds = array<i64: 8, 64>}]} {
    %c8_i32 = arith.constant 8 : i32
    %0 = arith.muli %arg0, %c8_i32 : i32
    %1 = tpu.assume_multiple %0, 8 : i32
    %2 = arith.index_cast %1 : i32 to index
    %c0 = arith.constant 0 : index
    %3 = vector.load %arg2[%2, %c0] : memref<8x32xf32, #tpu.memory_space<vmem>>, vector<8x32xf32>
    %4 = tpu.concatenate %3, %3 in 1 : vector<8x32xf32>, vector<8x32xf32> -> vector<8x64xf32>
    %c0_0 = arith.constant 0 : index
    %c0_1 = arith.constant 0 : index
    %5 = vector.load %arg1[%c0_0, %c0_1] : memref<8x64xf32, #tpu.memory_space<vmem>>, vector<8x64xf32>
    %6 = arith.addf %5, %4 : vector<8x64xf32>
    %c0_2 = arith.constant 0 : index
    %c0_3 = arith.constant 0 : index
    %7 = vector.load %arg3[%c0_2, %c0_3] : memref<8x64xf32, #tpu.memory_space<vmem>>, vector<8x64xf32>
    tpu.vector_store %arg3[%c0_2, %c0_3], %6 {strides = array<i32>} : memref<8x64xf32, #tpu.memory_space<vmem>>, vector<8x64xf32>,
    return
  }
  func.func @transform_0(%arg0: i32) -> (i32, i32) {
    %c0_i32 = arith.constant 0 : i32
    %c0_i32_0 = arith.constant 0 : i32
    return %arg0, %c0_i32 : i32, i32
  }
  func.func @transform_1(%arg0: i32) -> (i32, i32) {
    %c0_i32 = arith.constant 0 : i32
    %c0_i32_0 = arith.constant 0 : i32
    %c0_i32_1 = arith.constant 0 : i32
    return %c0_i32, %c0_i32_0 : i32, i32
  }
  func.func @transform_2(%arg0: i32) -> (i32, i32) {
    %c0_i32 = arith.constant 0 : i32
    %c0_i32_0 = arith.constant 0 : i32
    return %arg0, %c0_i32 : i32, i32
  }
}

</mosaic_0001>

<bundles_post_ra>
// kernel: tpu_custom_call.1
= control target key start
LH: loop header
LB: loop body
LE: loop exit
PB: predicated region body
PF: predicated region fallthrough
CT: control target
= control target key end

     0   :  { %7 = vsyncpa [#allocation3], 0  ;;  %s196_s0 = inlined_call_operand.hbm [shape: f32[8,64], index: 0, kind: input, shape index: {}]   ;;  %s197_s1 = inlined_call_operand.hbm [shape: f32[8,32], index: 1, kind: input, shape index: {}]   ;;  %s198_s2 = inlined_call_operand.hbm [shape: f32[8,64], index: 2, kind: output, shape index: {}]  }
   0x1   :  { %8 = vsyncpa [#allocation6], 0 }
   0x2   :  { %9 = vsyncpa [#allocation4], 0  ;;  %s141_s9 = smov [#allocation2]   ;;  %s142_s11 = smov [#allocation5]  }
   0x3   :  { %s16_s10 = sshll.u32 %s141_s9, 4  ;;  %s26_s12 = sshll.u32 %s142_s11, 4  ;;  %s17_s10 = int_to_ptr.vmem [resolvable:$true] %s16_s10  ;;  %s27_s12 = int_to_ptr.vmem [resolvable:$true] %s26_s12 }
   0x4   :  { %s69_s15 = scalar_lea.hbm %s196_s0, 128 }
   0x5   :  { %p70_p0 = scmp.ne.s32.totalorder %s196_s0, %s69_s15  ;;  %p73_p1 = scmp.lt.u32.totalorder %s69_s15, %s196_s0 }
   0x7   :  { %p75_p2 = pnand %p73_p1, %p70_p0 }
   0x9   :  { %78 = shalt.err (!%p75_p2)
}
   0xa   :  { %s79_s20 = scalar_lea.vmem %s17_s10, 128  ;;  %p84_p4 = scmp.lt.s32.totalorder %s17_s10, %s17_s10 }
   0xb   :  { %p80_p3 = scmp.ne.s32.totalorder %s17_s10, %s79_s20  ;;  %p85_p5 = scmp.lt.s32.totalorder %s79_s20, %s79_s20 }
   0xd   :  { %p86_p6 = por %p85_p5, %p84_p4 }
   0xf   :  { %p87_p7 = pnand %p86_p6, %p80_p3 }
  0x11   :  { %90 = shalt.err (!%p87_p7)
}
  0x12   :  { %19 = dma.hbm_to_vmem [thread:$0]  %s196_s0, 128, %s17_s10, [#allocation3]  }
  0x13   :  { %s91_s25 = scalar_lea.hbm %s197_s1, 128 }
  0x14   :  { %p92_p8 = scmp.ne.s32.totalorder %s197_s1, %s91_s25  ;;  %p95_p9 = scmp.lt.u32.totalorder %s91_s25, %s197_s1 }
  0x16   :  { %p97_p10 = pnand %p95_p9, %p92_p8 }
  0x18   :  { %100 = shalt.err (!%p97_p10)
}
  0x19   :  { %s101_s30 = scalar_lea.vmem %s27_s12, 128  ;;  %p106_p12 = scmp.lt.s32.totalorder %s27_s12, %s27_s12 }
  0x1a   :  { %p102_p11 = scmp.ne.s32.totalorder %s27_s12, %s101_s30  ;;  %p107_p13 = scmp.lt.s32.totalorder %s101_s30, %s101_s30 }
  0x1c   :  { %p108_p0 = por %p107_p13, %p106_p12 }
  0x1e   :  { %p109_p1 = pnand %p108_p0, %p102_p11 }
  0x20   :  { %112 = shalt.err (!%p109_p1)
}
  0x21   :  { %29 = dma.hbm_to_vmem [thread:$0]  %s197_s1, 128, %s27_s12, [#allocation6]  }
  0x22   :  { %135 = dma.done.wait [#allocation3], 128  }
  0x23   :  { %136 = vsyncadd [#allocation3], 4294967168 }
  0x24   :  { %137 = dma.done.wait [#allocation6], 128  }
  0x25   :  { %138 = vsyncadd [#allocation6], 4294967168  ;;  %v38_v0 = vld [vmem:[#allocation5] sm:$0xff]  ;;  %s143_s4 = smov 32   ;;  %vm43_vm0 = vcmask 261120   ;;  %v45_v1 = vld [vmem:[#allocation2] sm:$0xff] }
  0x26   :  { %40 = vrot.lane.b32.xlu0 %v38_v0, %s143_s4  ;;  %s144_s5 = smov [#allocation7]   ;;  %vm47_vm1 = vcmask 523264  }
  0x27   :  { %s55_s6 = sshll.u32 %s144_s5, 4  ;;  %s56_s6 = int_to_ptr.vmem [resolvable:$true] %s55_s6 }
  0x28   :  { %s113_s7 = scalar_lea.vmem %s56_s6, 128  ;;  %p118_p3 = scmp.lt.s32.totalorder %s56_s6, %s56_s6 }
  0x29   :  { %p114_p2 = scmp.ne.s32.totalorder %s56_s6, %s113_s7  ;;  %p119_p4 = scmp.lt.s32.totalorder %s113_s7, %s113_s7 }
  0x2b   :  { %p120_p5 = por %p119_p4, %p118_p3 }
  0x2d   :  { %p121_p6 = pnand %p120_p5, %p114_p2 }
  0x98   :  { %v41_v2 = vpop.permute.xlu0 %40 }
  0x99   :  { %v44_v3 = vsel %vm43_vm0, %v38_v0, %v41_v2 }
  0x9a   :  { %v46_v4 = vadd.f32 %v45_v1, %v44_v3 }
  0x9c   :  { %48 = vst.msk [vmem:[#allocation7] sm:$0xff] %vm47_vm1, %v46_v4 }
  0x9d   :  { %124 = shalt.err (!%p121_p6)
}
  0x9e   :  { %s125_s9 = scalar_lea.hbm %s198_s2, 128 }
  0x9f   :  { %p126_p7 = scmp.ne.s32.totalorder %s198_s2, %s125_s9  ;;  %p129_p8 = scmp.lt.u32.totalorder %s125_s9, %s198_s2 }
  0xa1   :  { %p131_p9 = pnand %p129_p8, %p126_p7 }
  0xa3   :  { %134 = shalt.err (!%p131_p9)
}
  0xa4   :  { %58 = dma.vmem_to_hbm [thread:$0]  %s56_s6, 128, %s198_s2, [#allocation4]  }
  0xa5   :  { %139 = dma.done.wait [#allocation4], 128  }
  0xa6   :  { %140 = vsyncadd [#allocation4], 4294967168 }
  0xa7   :  { %62 = vsyncpa [#allocation3], 1 }
  0xa8   :  { %63 = vsyncpa [#allocation6], 1 }
  0xa9   :  { %64 = vsyncpa [#allocation4], 1 }

</bundles_post_ra>
